<compile_context>
chip_gen: v6e
topology: v6e:2x2x1
jax: 0.10.0
libtpu: 0.0.40
codegen_flags: <defaults>
</compile_context>

<pallas_src>
import functools

import jax
import jax.numpy as jnp
from jax import lax
from jax.experimental import pallas as pl
from jax.experimental.pallas import tpu as pltpu


def _codebook_kernel(z_ref, e_ref, e2_ref, zq_ref, idx_ref, sq_ref, *, hw, tile):
    """One (batch, spatial-tile) grid step, channel-major.

    z_ref  : (1, D, T)   latents tile (lanes = spatial positions)
    e_ref  : (K, D)      full codebook
    e2_ref : (K, 1)      precomputed 0.5 * |e|^2 (f32)
    zq_ref : (1, D, T)   quantized output (forward value == straight-through)
    idx_ref: (1, 1, T)   argmin codebook indices (int32), lane-dense
    sq_ref : (1, 1, 1, 1) per-tile partial sum of squared error (z_q - z)^2
    """
    z = z_ref[0]                                   # (D, T), native dtype
    e = e_ref[...]                                 # (K, D), native dtype
    e2h = e2_ref[...]                              # (K, 1), f32

    # Reduced distance: 0.5*|e|^2 - e . z   (argmin-equivalent to the full
    # |z|^2 + |e|^2 - 2 z.e formula; |z|^2 is constant per column, /2 monotone).
    # Operands fed at native dtype (bf16 stays bf16 on the MXU), f32 accumulate.
    ze = lax.dot_general(e, z,
                         dimension_numbers=(((1,), (0,)), ((), ())),
                         preferred_element_type=jnp.float32)        # (K, T)
    dist = e2h - ze                                                 # (K, T)

    # First-occurrence argmin over the codebook (sublane) axis, expressed with
    # plain min reductions + iota (robust Mosaic lowering, torch.argmin ties).
    kiota = lax.broadcasted_iota(jnp.int32, dist.shape, 0)          # (K, T)
    min_d = jnp.min(dist, axis=0, keepdims=True)                    # (1, T)
    cand = jnp.where(dist == min_d, kiota, dist.shape[0])
    idx = jnp.min(cand, axis=0, keepdims=True)                      # (1, T)
    idx_ref[...] = idx[None].astype(jnp.int32)                      # (1, 1, T)

    # Gather codebook rows via one-hot matmul (MXU); result stays channel-major.
    onehot = (kiota == idx).astype(e.dtype)                         # (K, T)
    z_q = lax.dot_general(e, onehot,
                          dimension_numbers=(((0,), (0,)), ((), ())),
                          preferred_element_type=jnp.float32)       # (D, T)

    # Per-tile partial loss numerator (reduced across tiles in the wrapper).
    diff = z_q - z.astype(jnp.float32)
    if hw % tile != 0:
        # Padded tail lanes exist: exclude them from the loss partial.
        lane = lax.broadcasted_iota(jnp.int32, diff.shape, 1)
        valid = (pl.program_id(1) * tile + lane) < hw
        diff = jnp.where(valid, diff, 0.0)
    sq_ref[...] = jnp.sum(diff * diff).reshape(1, 1, 1, 1)

    # Straight-through forward value: z + (z_q - z) == z_q.
    zq_ref[0] = z_q.astype(zq_ref.dtype)


def _vmem_capacity_bytes():
    try:
        return int(pltpu.get_tpu_info().vmem_capacity_bytes)
    except Exception:
        return 64 * 1024 * 1024  # conservative fallback (v7x per-TC VMEM)


def _choose_spatial_tile(hw, d, k, elt_bytes, requested, vmem_cap, batch):
    """Largest 128-multiple spatial tile that fits a per-chip VMEM budget."""
    hw128 = -(-hw // 128) * 128
    const = 2 * (k * d + k) * 4                      # codebook + norms, dbl-buffered
    per_lane = 2 * 2 * d * elt_bytes + 2 * k * 4     # z/z_q blocks + dist/onehot
    budget = max(int(0.40 * vmem_cap) - const, per_lane * 128)
    t_budget = (budget // per_lane) // 128 * 128
    t = max(128, min(requested, t_budget, hw128) // 128 * 128)
    # Keep >= 2 grid steps so the "parallel" axes can shard across TCs (v7x).
    while t > 128 and batch * (-(-hw128 // t)) < 2:
        t = max(128, (t // 2) // 128 * 128)
    return t


def _vmem_limit_bytes(tile, d, k, elt_bytes, vmem_cap):
    need = (2 * 2 * d * tile * elt_bytes     # z + z_q, double-buffered
            + 2 * (k * d + k) * 4            # codebook + half-norms, double-buffered
            + 3 * k * tile * 4               # dist / onehot / select temporaries
            + (8 << 20))                     # compiler headroom
    return int(min(0.75 * vmem_cap, max(32 << 20, need)))


@functools.partial(jax.jit,
                   static_argnames=("beta", "tile", "hw_pad", "vmem_limit"))
def _codebook_forward_impl(z_nchw, embedding, *, beta, tile, hw_pad, vmem_limit):
    B, C, H, W = z_nchw.shape
    K, D = embedding.shape
    hw = H * W
    elt = jnp.dtype(z_nchw.dtype).itemsize

    # Channel-major view: free reshape, no transpose.
    z3 = z_nchw.reshape(B, D, hw)
    if hw_pad != hw:
        z3 = jnp.pad(z3, ((0, 0), (0, 0), (0, hw_pad - hw)))
    n_tiles = hw_pad // tile

    # Hoisted 0.5 * |e|^2 (folds the "2 *" of the distance into the wrapper).
    e2_half = 0.5 * jnp.sum(embedding.astype(jnp.float32) ** 2,
                            axis=1, keepdims=True)                  # (K, 1)

    kernel = functools.partial(_codebook_kernel, hw=hw, tile=tile)

    # TODO(synk): for very large K (>= 4096), add a K grid axis with an online
    # running-min/one-hot accumulation and single-buffer the codebook inputs
    # (pipeline_mode=pl.Buffered(1)) to bound VMEM on v7x; unnecessary here.
    zq3, idx3, sq = pl.pallas_call(
        kernel,
        out_shape=(
            jax.ShapeDtypeStruct((B, D, hw_pad), z_nchw.dtype),
            jax.ShapeDtypeStruct((B, 1, hw_pad), jnp.int32),
            jax.ShapeDtypeStruct((B, n_tiles, 1, 1), jnp.float32),
        ),
        grid_spec=pltpu.PrefetchScalarGridSpec(
            num_scalar_prefetch=0,
            grid=(B, n_tiles),
            in_specs=[
                pl.BlockSpec((1, D, tile), lambda b, j: (b, 0, j)),   # z tile
                pl.BlockSpec((K, D), lambda b, j: (0, 0)),            # codebook
                pl.BlockSpec((K, 1), lambda b, j: (0, 0)),            # 0.5*|e|^2
            ],
            out_specs=[
                pl.BlockSpec((1, D, tile), lambda b, j: (b, 0, j)),   # z_q tile
                pl.BlockSpec((1, 1, tile), lambda b, j: (b, 0, j)),   # indices
                pl.BlockSpec((1, 1, 1, 1), lambda b, j: (b, j, 0, 0)),  # sq part
            ],
        ),
        compiler_params=pltpu.CompilerParams(
            dimension_semantics=("parallel", "parallel"),
            vmem_limit_bytes=vmem_limit,
        ),
        cost_estimate=pl.CostEstimate(
            flops=4 * B * hw_pad * K * D,
            transcendentals=0,
            bytes_accessed=(2 * B * hw_pad * D * elt
                            + B * hw_pad * 4 + (K * D + K) * 4),
        ),
    )(z3, embedding, e2_half)

    # loss = mean((z_q.detach()-z)^2) + beta*mean((z_q - z.detach())^2)
    # Forward values of both terms are identical; detach only affects grads.
    # TODO(synk): straight-through / detach gradient semantics not represented
    # (forward only).
    mean_sq = jnp.sum(sq) / jnp.float32(B * hw * D)
    loss = (1.0 + beta) * mean_sq

    min_encoding_indices = idx3[:, 0, :hw].reshape(B * hw)           # (N,) int32
    z_q = zq3[:, :, :hw].reshape(B, D, H, W)                         # NCHW, no transpose
    return z_q, min_encoding_indices, loss


def codebook_forward(z_nchw, embedding, *, beta=0.25, tile_hw=4096):
    """z_nchw: (B, C, H, W) with C == latent_dim; embedding: (K, latent_dim)."""
    B, C, H, W = z_nchw.shape
    K, D = embedding.shape
    assert C == D
    hw = H * W
    elt = jnp.dtype(z_nchw.dtype).itemsize

    vmem_cap = _vmem_capacity_bytes()
    tile = _choose_spatial_tile(hw, D, K, elt, tile_hw, vmem_cap, B)
    hw_pad = -(-hw // tile) * tile
    vmem_limit = _vmem_limit_bytes(tile, D, K, elt, vmem_cap)
    return _codebook_forward_impl(z_nchw, embedding, beta=float(beta),
                                  tile=tile, hw_pad=hw_pad,
                                  vmem_limit=vmem_limit)


def _reference(z, embedding, beta):
    """Pure-JAX forward reference matching the PyTorch formula."""
    B, D, H, W = z.shape
    zf = jnp.transpose(z, (0, 2, 3, 1)).reshape(-1, D)
    dist = (jnp.sum(zf ** 2, axis=1, keepdims=True)
            + jnp.sum(embedding ** 2, axis=1)
            - 2.0 * zf @ embedding.T)
    idx = jnp.argmin(dist, axis=1).astype(jnp.int32)
    zq = embedding[idx].reshape(B, H, W, D).transpose(0, 3, 1, 2)
    loss = (1.0 + beta) * jnp.mean((zq - z) ** 2)
    return zq, idx, loss


if __name__ == "__main__":
    # Small, deterministic config consistent with the module.
    num_codebook_vectors = 64
    latent_dim = 32
    beta = 0.25
    B, H, W = 2, 16, 16                                # N = B*H*W = 512

    key = jax.random.PRNGKey(0)
    k_emb, k_z, k_z2 = jax.random.split(key, 3)

    # nn.Embedding weight ~ U(-1/K, 1/K), deterministic init.
    embedding = jax.random.uniform(
        k_emb, (num_codebook_vectors, latent_dim), dtype=jnp.float32,
        minval=-1.0 / num_codebook_vectors, maxval=1.0 / num_codebook_vectors)

    z = jax.random.normal(k_z, (B, latent_dim, H, W), dtype=jnp.float32)

    # tile_hw=128 -> 2 spatial tiles per batch (4 grid steps), multi-tile path.
    z_q, indices, loss = codebook_forward(z, embedding, beta=beta, tile_hw=128)
    jax.block_until_ready((z_q, indices, loss))

    zq_ref, idx_ref, loss_ref = _reference(z, embedding, beta)
    assert z_q.shape == z.shape
    assert bool(jnp.all(indices == idx_ref))
    assert bool(jnp.allclose(z_q, zq_ref, atol=1e-5))
    assert bool(jnp.allclose(loss, loss_ref, atol=1e-5))

    # Ragged spatial extent: H*W = 100 -> padded to 128, tail lanes masked.
    H2, W2 = 10, 10
    z2 = jax.random.normal(k_z2, (B, latent_dim, H2, W2), dtype=jnp.float32)
    z_q2, indices2, loss2 = codebook_forward(z2, embedding, beta=beta)
    jax.block_until_ready((z_q2, indices2, loss2))

    zq2_ref, idx2_ref, loss2_ref = _reference(z2, embedding, beta)
    assert z_q2.shape == z2.shape
    assert bool(jnp.all(indices2 == idx2_ref))
    assert bool(jnp.allclose(z_q2, zq2_ref, atol=1e-5))
    assert bool(jnp.allclose(loss2, loss2_ref, atol=1e-5))

    print("KERNEL_OK")
</pallas_src>

<mosaic_0001>
module attributes {stable_mosaic.version = 11 : i64} {
  func.func @_codebook_kernel(%arg0: i32, %arg1: i32, %arg2: memref<1x32x128xf32, #tpu.memory_space<vmem>>, %arg3: memref<64x32xf32, #tpu.memory_space<vmem>>, %arg4: memref<64x1xf32, #tpu.memory_space<vmem>>, %arg5: memref<1x32x128xf32, #tpu.memory_space<vmem>>, %arg6: memref<1x1x128xi32, #tpu.memory_space<vmem>>, %arg7: memref<1x1x1x1xf32, #tpu.memory_space<vmem>>) attributes {dimension_semantics = [#tpu.dimension_semantics<parallel>, #tpu.dimension_semantics<parallel>], iteration_bounds = array<i64: 2, 2>, scalar_prefetch = 0 : i64, scratch_operands = 0 : i64, tpu.core_type = #tpu.core_type<tc>, window_params = [{transform_indices = @transform_0, window_bounds = array<i64: 1, 32, 128>}, {pipeline_mode = #tpu.pipeline_mode<synchronous>, transform_indices = @transform_1, window_bounds = array<i64: 64, 32>}, {pipeline_mode = #tpu.pipeline_mode<synchronous>, transform_indices = @transform_2, window_bounds = array<i64: 64, 1>}, {transform_indices = @transform_3, window_bounds = array<i64: 1, 32, 128>}, {transform_indices = @transform_4, window_bounds = array<i64: 1, 1, 128>}, {transform_indices = @transform_5, window_bounds = array<i64: 1, 1, 1, 1>}]} {
    %c0 = arith.constant 0 : index
    %c0_0 = arith.constant 0 : index
    %c0_1 = arith.constant 0 : index
    %0 = vector.load %arg2[%c0, %c0_0, %c0_1] : memref<1x32x128xf32, #tpu.memory_space<vmem>>, vector<1x32x128xf32>
    %1 = vector.shape_cast %0 : vector<1x32x128xf32> to vector<32x128xf32>
    %c0_2 = arith.constant 0 : index
    %c0_3 = arith.constant 0 : index
    %2 = vector.load %arg3[%c0_2, %c0_3] : memref<64x32xf32, #tpu.memory_space<vmem>>, vector<64x32xf32>
    %c0_4 = arith.constant 0 : index
    %c0_5 = arith.constant 0 : index
    %3 = vector.load %arg4[%c0_4, %c0_5] : memref<64x1xf32, #tpu.memory_space<vmem>>, vector<64x1xf32>
    %cst = arith.constant dense<0.000000e+00> : vector<64x128xf32>
    %4 = tpu.matmul %2, %1, %cst {dimension_numbers = #tpu.dot_dimension_numbers<[1], [0], [0], [1], [0, 0, 1, 1], [], []>} : vector<64x32xf32>, vector<32x128xf32>, vector<64x128xf32> -> vector<64x128xf32>
    %5 = vector.broadcast %3 : vector<64x1xf32> to vector<64x128xf32>
    %6 = arith.subf %5, %4 : vector<64x128xf32>
    %7 = tpu.iota {dimensions = array<i32: 0>} : vector<64x128xi32>
    %cst_6 = arith.constant dense<0x7F800000> : vector<128xf32>
    %8 = vector.multi_reduction <minimumf>, %6, %cst_6 [0] : vector<64x128xf32> to vector<128xf32>
    %9 = vector.shape_cast %8 : vector<128xf32> to vector<1x128xf32>
    %10 = vector.broadcast %9 : vector<1x128xf32> to vector<64x128xf32>
    %11 = arith.cmpf oeq, %6, %10 : vector<64x128xf32>
    %c64_i32 = arith.constant 64 : i32
    %12 = vector.broadcast %c64_i32 : i32 to vector<64x128xi32>
    %13 = arith.select %11, %7, %12 : vector<64x128xi1>, vector<64x128xi32>
    %cst_7 = arith.constant dense<2147483647> : vector<128xi32>
    %14 = vector.multi_reduction <minsi>, %13, %cst_7 [0] : vector<64x128xi32> to vector<128xi32>
    %15 = vector.shape_cast %14 : vector<128xi32> to vector<1x128xi32>
    %16 = vector.shape_cast %15 : vector<1x128xi32> to vector<1x1x128xi32>
    %c0_8 = arith.constant 0 : index
    %c0_9 = arith.constant 0 : index
    %c0_10 = arith.constant 0 : index
    %17 = vector.load %arg6[%c0_8, %c0_9, %c0_10] : memref<1x1x128xi32, #tpu.memory_space<vmem>>, vector<1x1x128xi32>
    tpu.vector_store %arg6[%c0_8, %c0_9, %c0_10], %16 {strides = array<i32>} : memref<1x1x128xi32, #tpu.memory_space<vmem>>, vector<1x1x128xi32>,
    %18 = vector.broadcast %15 : vector<1x128xi32> to vector<64x128xi32>
    %19 = arith.cmpi eq, %7, %18 : vector<64x128xi32>
    %20 = arith.extui %19 : vector<64x128xi1> to vector<64x128xi32>
    %21 = arith.sitofp %20 : vector<64x128xi32> to vector<64x128xf32>
    %cst_11 = arith.constant dense<0.000000e+00> : vector<32x128xf32>
    %22 = tpu.matmul %2, %21, %cst_11 {dimension_numbers = #tpu.dot_dimension_numbers<[0], [0], [1], [1], [0, 1, 1, 1], [], []>} : vector<64x32xf32>, vector<64x128xf32>, vector<32x128xf32> -> vector<32x128xf32>
    %23 = arith.subf %22, %1 : vector<32x128xf32>
    %24 = arith.mulf %23, %23 : vector<32x128xf32>
    %25 = vector.shape_cast %24 : vector<32x128xf32> to vector<1x32x128xf32>
    %cst_12 = arith.constant dense<0.000000e+00> : vector<1xf32>
    %26 = vector.multi_reduction <add>, %25, %cst_12 [1, 2] : vector<1x32x128xf32> to vector<1xf32>
    %27 = vector.shape_cast %26 : vector<1xf32> to vector<1x1x1xf32>
    %28 = vector.extract %27[0, 0, 0] : f32 from vector<1x1x1xf32>
    %29 = vector.broadcast %28 : f32 to vector<1x1x1x1xf32>
    %c0_13 = arith.constant 0 : index
    %c0_14 = arith.constant 0 : index
    %c0_15 = arith.constant 0 : index
    %c0_16 = arith.constant 0 : index
    %30 = vector.load %arg7[%c0_13, %c0_14, %c0_15, %c0_16] : memref<1x1x1x1xf32, #tpu.memory_space<vmem>>, vector<1x1x1x1xf32>
    tpu.vector_store %arg7[%c0_13, %c0_14, %c0_15, %c0_16], %29 {strides = array<i32>} : memref<1x1x1x1xf32, #tpu.memory_space<vmem>>, vector<1x1x1x1xf32>,
    %c0_17 = arith.constant 0 : index
    %c0_18 = arith.constant 0 : index
    %c0_19 = arith.constant 0 : index
    %31 = vector.load %arg5[%c0_17, %c0_18, %c0_19] : memref<1x32x128xf32, #tpu.memory_space<vmem>>, vector<1x32x128xf32>
    %32 = vector.shape_cast %31 : vector<1x32x128xf32> to vector<32x128xf32>
    %33 = vector.shape_cast %22 : vector<32x128xf32> to vector<1x32x128xf32>
    tpu.vector_store %arg5[%c0_17, %c0_18, %c0_19], %33 {strides = array<i32>} : memref<1x32x128xf32, #tpu.memory_space<vmem>>, vector<1x32x128xf32>,
    return
  }
  func.func @transform_0(%arg0: i32, %arg1: i32) -> (i32, i32, i32) {
    %c0_i32 = arith.constant 0 : i32
    %c0_i32_0 = arith.constant 0 : i32
    return %arg0, %c0_i32, %arg1 : i32, i32, i32
  }
  func.func @transform_1(%arg0: i32, %arg1: i32) -> (i32, i32) {
    %c0_i32 = arith.constant 0 : i32
    %c0_i32_0 = arith.constant 0 : i32
    %c0_i32_1 = arith.constant 0 : i32
    return %c0_i32, %c0_i32_0 : i32, i32
  }
  func.func @transform_2(%arg0: i32, %arg1: i32) -> (i32, i32) {
    %c0_i32 = arith.constant 0 : i32
    %c0_i32_0 = arith.constant 0 : i32
    %c0_i32_1 = arith.constant 0 : i32
    return %c0_i32, %c0_i32_0 : i32, i32
  }
  func.func @transform_3(%arg0: i32, %arg1: i32) -> (i32, i32, i32) {
    %c0_i32 = arith.constant 0 : i32
    %c0_i32_0 = arith.constant 0 : i32
    return %arg0, %c0_i32, %arg1 : i32, i32, i32
  }
  func.func @transform_4(%arg0: i32, %arg1: i32) -> (i32, i32, i32) {
    %c0_i32 = arith.constant 0 : i32
    %c0_i32_0 = arith.constant 0 : i32
    return %arg0, %c0_i32, %arg1 : i32, i32, i32
  }
  func.func @transform_5(%arg0: i32, %arg1: i32) -> (i32, i32, i32, i32) {
    %c0_i32 = arith.constant 0 : i32
    %c0_i32_0 = arith.constant 0 : i32
    %c0_i32_1 = arith.constant 0 : i32
    return %arg0, %arg1, %c0_i32, %c0_i32_0 : i32, i32, i32, i32
  }
}

</mosaic_0001>

<bundles_post_ra>
// kernel: _codebook_forward_impl.1
= control target key start
LH: loop header
LB: loop body
LE: loop exit
PB: predicated region body
PF: predicated region fallthrough
CT: control target
= control target key end

     0   :  { %s1559_s0 = inlined_call_operand.vmem [shape: f32[2,32,256], index: 0, kind: input, shape index: {}]   ;;  %s1560_s1 = inlined_call_operand.vmem [shape: f32[64,32], index: 1, kind: input, shape index: {}]   ;;  %s1561_s2 = inlined_call_operand.vmem [shape: f32[64,1], index: 2, kind: input, shape index: {}]   ;;  %s1562_s3 = inlined_call_operand.vmem [shape: f32[2,32,256], index: 3, kind: output, shape index: {0}]   ;;  %s1563_s4 = inlined_call_operand.hbm [shape: s32[2,1,256], index: 4, kind: output, shape index: {1}]   ;;  %s1564_s5 = inlined_call_operand.vmem [shape: f32[2,2,1,1], index: 5, kind: output, shape index: {2}]  }
   0x1   :  { %1565 = sst [smem:[#allocation7_spill]] %s1559_s0 }
   0x2   :  { %11 = vsyncpa [#allocation5], 0 }
   0x3   :  { %13 = vsyncpa [#allocation5 + $0x1], 0  ;;  %s1290_s18 = smov 0   ;;  %s1292_s19 = smov 0  }
   0x4   :  { %s1294_s20 = smov 0   ;;  %s1296_s21 = smov 0  }
   0x5   :  { %s1298_s22 = smov 0   ;;  %s1300_s23 = smov 0  }
   0x6   :  { %s1302_s24 = smov 0   ;;  %s1304_s25 = smov 0  }
   0x7 LB: > { %s973_s26 = sadd.s32 4294967295, %s1255_s25   ;;  %s974_s27 = sadd.s32 4294967294, %s1255_s25   ;;  %s1255_s25 = sphi %s1304_s25, %s19_s25   ;;  %s1251_s24 = sphi %s1302_s24, %s1577_s24   ;;  %s1247_s23 = sphi %s1300_s23, %s1576_s23   ;;  %s1243_s22 = sphi %s1298_s22, %s1575_s22   ;;  %s1239_s21 = sphi %s1296_s21, %s1574_s21   ;;  %s1235_s20 = sphi %s1294_s20, %s1573_s20   ;;  %s1231_s19 = sphi %s1292_s19, %s1572_s19   ;;  %s1227_s18 = sphi %s1290_s18, %s1571_s18  }
   0x8   : > { %s28_s28 = sadd.s32 1, %s1247_s23  ;;  %s31_s29 = sadd.s32 1, %s1251_s24 }
   0x9   : > { %p29_p0 = scmp.ge.s32.totalorder %s28_s28, 2  ;;  %p47_p1 = scmp.ne.s32.totalorder %s1235_s20, %s1231_s19 }
   0xa   : > { %p48_p2 = scmp.eq.s32.totalorder %s1255_s25, 0  ;;  %p121_p5 = scmp.eq.s32.totalorder %s973_s26, 3 }
   0xb   : > { %s1579_s28 = smov (%p29_p0, %s28_s28), 0  ;;  %s1581_s29 = smov (!%p29_p0, %s31_s29), %s1251_s24 }
   0xc   : > { %s36_s30 = ssub.s32 %s1247_s23, %s1579_s28  ;;  %p1342_p3 = por %p48_p2, %p47_p1 }
   0xd   : > { %p33_p4 = scmp.ge.s32.totalorder %s1581_s29, 2  ;;  %p154_p6 = scmp.ne.s32.totalorder %s1231_s19, %s1227_s18 }
   0xe   : > { %p155_p7 = scmp.eq.s32.totalorder %s974_s27, 3  ;;  %p1350_p8 = por %p121_p5, %p47_p1 }
   0xf   : > { %s1583_s29 = smov (%p33_p4, %s1581_s29), 0  ;;  %s40_s11 = sadd.s32 1, %s1235_s20 }
  0x10   : > { %p1354_p9 = por %p155_p7, %p154_p6  ;;  %s35_s9 = ssub.s32 %s1251_s24, %s1583_s29 }
  0x11   : > { %s37_s10 = sor.u32 %s36_s30, %s35_s9  ;;  %p976_p11 = scmp.ge.s32.totalorder %s1255_s25, 4 }
  0x12   : > { %p38_p10 = scmp.eq.s32.totalorder %s37_s10, 0 }
  0x13   : > { %205 = sbr.rel (%p976_p11) target bundleno = 36 (0x24), region = 24 }
  0x14   : > { %s1362_s12 = scalar_select %p38_p10, %s1235_s20, %s40_s11  }
  0x18   : > { %208 = sbr.rel (!%p1342_p3) target bundleno = 36 (0x24), region = 28  ;;  %s210_s13 = sand.u32 (%p1342_p3), 1, %s1235_s20  }
  0x19   : > { %s978_s14 = sshll.u32 (%p1342_p3), %s1251_s24, 3  ;;  %s977_s15 = sshll.u32 (%p1342_p3), %s210_s13, 5 }
  0x1a   : > { %s214_s16 = sadd.s32 (%p1342_p3), %s1247_s23, %s978_s14  ;;  %s1569_s0 = sld [smem:[#allocation7_spill]] (%p1342_p3) }
  0x1b   : > { %s979_s17 = sshll.u32 (%p1342_p3), %s214_s16, 3  ;;  %s212_s9 = scalar_lea.vmem (%p1342_p3), [#allocation2], %s977_s15 }
  0x20   : > { %s216_s30 = scalar_lea.vmem %s1569_s0, %s979_s17 }
  0x21   : > { %v251_v0 = vld [vmem:[%s216_s30] sm:$0xff]  ;;  %v253_v1 = vld [vmem:[%s216_s30 + $0x10] sm:$0xff] }
  0x22   : > { %v255_v2 = vld [vmem:[%s216_s30 + $0x20] sm:$0xff]  ;;  %252 = vst [vmem:[%s212_s9] sm:$0xff] %v251_v0  ;;  %254 = vst [vmem:[%s212_s9 + $0x8] sm:$0xff] %v253_v1  ;;  %v257_v3 = vld [vmem:[%s216_s30 + $0x30] sm:$0xff] }
  0x23   : > { %256 = vst [vmem:[%s212_s9 + $0x10] sm:$0xff] %v255_v2  ;;  %258 = vst [vmem:[%s212_s9 + $0x18] sm:$0xff] %v257_v3 }
  0x24 PF: > { %p980_p12 = scmp.ge.s32.totalorder %s1255_s25, 1  ;;  %p263_p13 = scmp.lt.s32.totalorder %s1255_s25, 5 }
  0x26   : > { %p264_p0 = pnand %p980_p12, %p263_p13 }
  0x27   : > { %s1376_s6 = sand.u32 (!%p264_p0), 1, %s1231_s19   ;;  %p307_p1 = scmp.lt.s32.totalorder (!%p264_p0), %s1243_s22, 1 }
  0x28   : > { %267 = sbr.rel (%p264_p0) target bundleno = 757 (0x2f5), region = 66  ;;  %s981_s13 = sshll.u32 (!%p264_p0), %s1376_s6, 5 }
  0x29   : > { %s272_s16 = scalar_lea.vmem (!%p264_p0), [#allocation2], %s981_s13  ;;  %s297_s15 = scalar_lea.vmem (!%p264_p0), [#allocation4], %s1376_s6 }
  0x2a   : > { %s1481_s17 = scalar_lea.vmem (!%p264_p0), [#allocation3], %s981_s13  ;;  %p309_p2 = scmp.lt.s32.totalorder (!%p264_p0), %s1239_s21, 1 }
  0x2d   : > { %v318_v4 = vld [vmem:[%s1560_s1] sm:$0xff]  ;;  %vm334_vm0 = vcmask 261120   ;;  %v1257_v5 = vmov 0   ;;  %v328_v6 = vld [vmem:[%s1561_s2 + $0x10] sm:$0xff]  ;;  %v1388_v7 = vld [vmem:[%s272_s16 + $0x18] sm:$0xff]  ;;  %vm630_vm1 = vcmask 523264   ;;  %v512_v58 = vlaneseq }
  0x2e   : > { %1051 = vmatprep.mubr.msk.f32.mxu0 %vm334_vm0, %v318_v4  ;;  %1162 = vset.pattern.permute.xlu1 %v1257_v5  ;;  %v1390_v8 = vld [vmem:[%s272_s16 + $0x10] sm:$0xff]  ;;  %v326_v9 = vld [vmem:[%s1561_s2] sm:$0xff]  ;;  %v329_v10 = vld [vmem:[%s1561_s2 + $0x18] sm:$0xff]  ;;  %s308_s13 = scalar_select %p307_p1, %s1243_s22, 1 }
  0x2f   : > { %1161 = vset.pattern.permute.xlu0 %v1257_v5  ;;  %476 = vperm.xlu1 %1162, %v328_v6   ;;  %v1400_v11 = vld [vmem:[%s272_s16 + $0x8] sm:$0xff]  ;;  %v1407_v13 = vld [vmem:[%s272_s16] sm:$0xff]  ;;  %v320_v16 = vld [vmem:[%s1560_s1 + $0x10] sm:$0xff]  ;;  %v1454_v61 = vshrl.u32 %v512_v58, 7  ;;  %s310_s26 = scalar_select %p309_p2, %s1239_s21, 1 }
  0x30   : > { %1043 = vmatprep.subr.mxu0 %v1388_v7  ;;  %466 = vperm.xlu0 %1161, %v326_v9   ;;  %v327_v12 = vld [vmem:[%s1561_s2 + $0x8] sm:$0xff]  ;;  %v330_v17 = vld [vmem:[%s1561_s2 + $0x20] sm:$0xff]  ;;  %v333_v18 = vld [vmem:[%s1561_s2 + $0x38] sm:$0xff]  ;;  %s983_s27 = sshll.u32 %s308_s13, 1  ;;  %s1013_s13 = sshll.u32 (%p1350_p8), %s1243_s22, 3 }
  0x31   : > { %1044 = vmatpush3.msra.mxu0 %v1388_v7  ;;  %v331_v14 = vld [vmem:[%s1561_s2 + $0x28] sm:$0xff]  ;;  %v321_v19 = vld [vmem:[%s1560_s1 + $0x18] sm:$0xff]  ;;  %v322_v20 = vld [vmem:[%s1560_s1 + $0x20] sm:$0xff]  ;;  %v1457_v0 = vadd.s32 16, %v1454_v61  ;;  %v519_v1 = vadd.s32 48, %v1454_v61  ;;  %v1461_v3 = vadd.s32 8, %v1454_v61  ;;  %s312_s16 = sadd.s32 %s983_s27, %s310_s26  ;;  %s774_s26 = sadd.s32 (%p1350_p8), %s1239_s21, %s1013_s13 }
  0x32   : > { %1045 = vmatprep.subr.mxu0 %v1390_v8  ;;  %v319_v15 = vld [vmem:[%s1560_s1 + $0x8] sm:$0xff]  ;;  %v332_v21 = vld [vmem:[%s1561_s2 + $0x30] sm:$0xff]  ;;  %v325_v24 = vld [vmem:[%s1560_s1 + $0x38] sm:$0xff]  ;;  %v517_v5 = vadd.s32 32, %v1454_v61  ;;  %v518_v6 = vadd.s32 40, %v1454_v61  ;;  %v520_v9 = vadd.s32 56, %v1454_v61  ;;  %s313_s10 = scalar_lea.vmem %s1564_s5, %s312_s16 }
  0x33   : > { %1046 = vmatpush3.msra.mxu0 %v1390_v8  ;;  %481 = vperm.xlu1 %1162, %v329_v10   ;;  %v323_v22 = vld [vmem:[%s1560_s1 + $0x28] sm:$0xff]  ;;  %v324_v23 = vld [vmem:[%s1560_s1 + $0x30] sm:$0xff]  ;;  %s1014_s27 = sshll.u32 (%p1350_p8), %s774_s26, 3 }
  0x34   : > { %1047 = vmatprep.subr.mxu0 %v1400_v11  ;;  %471 = vperm.xlu0 %1161, %v327_v12   ;;  %s776_s9 = scalar_lea.vmem (%p1350_p8), %s1562_s3, %s1014_s27 }
  0x35   : > { %1048 = vmatpush3.msra.mxu0 %v1400_v11 }
  0x36   : > { %1049 = vmatprep.subr.mxu0 %v1407_v13 }
  0x37   : > { %1050 = vmatpush3.msra.mxu0 %v1407_v13  ;;  %491 = vperm.xlu1 %1162, %v331_v14  }
  0x38   : > { %1052 = vmatmul.mubr.msk.f32.vlgmr.msra.gmra.mxu0 %vm334_vm0, %v319_v15  ;;  %486 = vperm.xlu0 %1161, %v330_v17  }
  0x39   : > { %1054 = vmatprep.mubr.msk.f32.mxu0 %vm334_vm0, %v320_v16 }
  0x3b   : > { %501 = vperm.xlu1 %1162, %v333_v18  }
  0x3c   : > { %1055 = vmatmul.mubr.msk.f32.gmra.mxu0 %vm334_vm0, %v321_v19  ;;  %496 = vperm.xlu0 %1161, %v332_v21  }
  0x3d   : > { %1057 = vmatprep.mubr.msk.f32.mxu0 %vm334_vm0, %v322_v20 }
  0x40   : > { %1058 = vmatmul.mubr.msk.f32.gmra.mxu0 %vm334_vm0, %v323_v22 }
  0x41   : > { %1060 = vmatprep.mubr.msk.f32.mxu0 %vm334_vm0, %v324_v23 }
  0x44   : > { %1061 = vmatmul.mubr.msk.f32.gmra.mxu0 %vm334_vm0, %v325_v24 }
  0x5a   : > { %598 = vxpose.xlu0.b32.start [1/8] (short) (narrow) %v318_v4, 32  ;;  %v516_v4 = vadd.s32 24, %v1454_v61 }
  0x5e   : > { %599 = vxpose.xlu0.b32.cont [2/8] (short) (narrow) %v319_v15, 32 }
  0x62   : > { %600 = vxpose.xlu0.b32.cont [3/8] (short) (narrow) %v320_v16, 32 }
  0x66   : > { %601 = vxpose.xlu0.b32.cont [4/8] (short) (narrow) %v321_v19, 32 }
  0x6a   : > { %602 = vxpose.xlu0.b32.cont [5/8] (short) (narrow) %v322_v20, 32 }
  0x6e   : > { %603 = vxpose.xlu0.b32.cont [6/8] (short) (narrow) %v323_v22, 32 }
  0x72   : > { %604 = vxpose.xlu0.b32.cont [7/8] (short) (narrow) %v324_v23, 32 }
  0x76   : > { %605 = vxpose.xlu0.b32.end [8/8] (short) (narrow) %v325_v24, 32 }
  0xaa   : > { %v477_v30 = vpop.permute.xlu1 %476 }
  0xab   : > { %v467_v25 = vpop.permute.xlu0 %466 }
  0xae   : > { %v482_v31 = vpop.permute.xlu1 %481 }
  0xaf   : > { %v472_v26 = vpop.permute.xlu0 %471 }
  0xb2   : > { %v492_v35 = vpop.permute.xlu1 %491 }
  0xb3   : > { %v487_v27 = vpop.permute.xlu0 %486 }
  0xb6   : > { %v502_v40 = vpop.permute.xlu1 %501 }
  0xb7   : > { %v497_v28 = vpop.permute.xlu0 %496 }
  0xd6   : > { %v614_v29 = vpop.trf.xlu0 }
  0xd7   : > { %1079 = vmatprep.mubr.msk.f32.mxu1 %vm630_vm1, %v614_v29 }
  0xf8   : > { %v1053_v32 = vpop.f32.mrf.mxu0 }
  0xf9   : > { %v505_v45 = vsub.f32 %v472_v26, %v1053_v32 }
  0xfa   : > { %v425_v33 = vpop.f32.mrf.mxu0 }
  0xfb   : > { %v504_v42 = vsub.f32 %v467_v25, %v425_v33  ;;  %v1258_v33 = vmov 1.0  }
  0xfc   : > { %v1056_v34 = vpop.f32.mrf.mxu0 }
  0xfd   : > { %v507_v47 = vsub.f32 %v482_v31, %v1056_v34  ;;  %v615_v34 = vpop.trf.xlu0 }
  0xfe   : > { %v435_v36 = vpop.f32.mrf.mxu0 }
  0xff   : > { %v506_v48 = vsub.f32 %v477_v30, %v435_v36 }
 0x100   : > { %v1059_v37 = vpop.f32.mrf.mxu0 }
 0x101   : > { %v509_v43 = vsub.f32 %v492_v35, %v1059_v37  ;;  %v616_v35 = vpop.trf.xlu0 }
 0x102   : > { %v445_v38 = vpop.f32.mrf.mxu0 }
 0x103   : > { %v508_v39 = vsub.f32 %v487_v27, %v445_v38  ;;  %v522_v51 = vmin.f32 %v505_v45, %v509_v43 }
 0x104   : > { %v1062_v41 = vpop.f32.mrf.mxu0 }
 0x105   : > { %v511_v44 = vsub.f32 %v502_v40, %v1062_v41  ;;  %v521_v49 = vmin.f32 %v504_v42, %v508_v39  ;;  %v617_v36 = vpop.trf.xlu0 }
 0x106   : > { %v455_v46 = vpop.f32.mrf.mxu0 }
 0x107   : > { %v510_v50 = vsub.f32 %v497_v28, %v455_v46  ;;  %v524_v52 = vmin.f32 %v507_v47, %v511_v44  ;;  %v525_v54 = vmin.f32 %v521_v49, %v522_v51 }
 0x109   : > { %v523_v53 = vmin.f32 %v506_v48, %v510_v50 }
 0x10b   : > { %v526_v55 = vmin.f32 %v523_v53, %v524_v52 }
 0x10d   : > { %v527_v56 = vmin.f32 %v525_v54, %v526_v55 }
 0x10f   : > { %v528_v57 = vrot.slane %v527_v56, 4 }
 0x111   : > { %v529_v59 = vmin.f32 %v527_v56, %v528_v57 }
 0x113   : > { %v530_v60 = vrot.slane %v529_v59, 2 }
 0x115   : > { %v531_v62 = vmin.f32 %v529_v59, %v530_v60 }
 0x117   : > { %v532_v63 = vrot.slane %v531_v62, 1 }
 0x119   : > { %v533_v2 = vmin.f32 %v531_v62, %v532_v63 }
 0x11b   : > { %vm536_vm2 = vcmp.eq.f32.partialorder %v506_v48, %v533_v2  ;;  %vm540_vm3 = vcmp.eq.f32.partialorder %v510_v50, %v533_v2  ;;  %vm534_vm4 = vcmp.eq.f32.partialorder %v504_v42, %v533_v2  ;;  %vm535_vm5 = vcmp.eq.f32.partialorder %v505_v45, %v533_v2 }
 0x11c   : > { %v544_v10 = vsel %vm536_vm2, %v1457_v0, 64  ;;  %v548_v12 = vsel %vm540_vm3, %v519_v1, 64  ;;  %vm537_vm6 = vcmp.eq.f32.partialorder %v507_v47, %v533_v2  ;;  %vm538_vm7 = vcmp.eq.f32.partialorder %v508_v39, %v533_v2 }
 0x11d   : > { %vm554_vm8 = vcmp.lt.s32.totalorder %v544_v10, %v548_v12  ;;  %vm539_vm9 = vcmp.eq.f32.partialorder %v509_v43, %v533_v2  ;;  %vm541_vm10 = vcmp.eq.f32.partialorder %v511_v44, %v533_v2  ;;  %v542_v14 = vsel %vm534_vm4, %v1454_v61, 64 }
 0x11e   : > { %v543_v15 = vsel %vm535_vm5, %v1461_v3, 64  ;;  %v545_v16 = vsel %vm537_vm6, %v516_v4, 64  ;;  %v546_v17 = vsel %vm538_vm7, %v517_v5, 64  ;;  %v555_v18 = vsel %vm554_vm8, %v544_v10, %v548_v12 }
 0x11f   : > { %v547_v19 = vsel %vm539_vm9, %v518_v6, 64  ;;  %v549_v20 = vsel %vm541_vm10, %v520_v9, 64  ;;  %vm550_vm11 = vcmp.lt.s32.totalorder %v542_v14, %v546_v17 }
 0x120   : > { %v551_v21 = vsel %vm550_vm11, %v542_v14, %v546_v17  ;;  %vm552_vm12 = vcmp.lt.s32.totalorder %v543_v15, %v547_v19  ;;  %vm556_vm13 = vcmp.lt.s32.totalorder %v545_v16, %v549_v20 }
 0x121   : > { %v553_v22 = vsel %vm552_vm12, %v543_v15, %v547_v19  ;;  %v557_v23 = vsel %vm556_vm13, %v545_v16, %v549_v20 }
 0x122   : > { %vm558_vm14 = vcmp.lt.s32.totalorder %v551_v21, %v553_v22  ;;  %vm560_vm15 = vcmp.lt.s32.totalorder %v555_v18, %v557_v23 }
 0x123   : > { %v559_v24 = vsel %vm558_vm14, %v551_v21, %v553_v22  ;;  %v561_v25 = vsel %vm560_vm15, %v555_v18, %v557_v23 }
 0x124   : > { %vm562_vm0 = vcmp.lt.s32.totalorder %v559_v24, %v561_v25 }
 0x125   : > { %v563_v26 = vsel %vm562_vm0, %v559_v24, %v561_v25 }
 0x126   : > { %v564_v27 = vrot.slane %v563_v26, 4 }
 0x128   : > { %vm565_vm2 = vcmp.lt.s32.totalorder %v563_v26, %v564_v27 }
 0x129   : > { %v566_v28 = vsel %vm565_vm2, %v563_v26, %v564_v27 }
 0x12a   : > { %v567_v29 = vrot.slane %v566_v28, 2 }
 0x12c   : > { %vm568_vm3 = vcmp.lt.s32.totalorder %v566_v28, %v567_v29 }
 0x12d   : > { %v569_v30 = vsel %vm568_vm3, %v566_v28, %v567_v29 }
 0x12e   : > { %v570_v31 = vrot.slane %v569_v30, 1 }
 0x130   : > { %vm571_vm4 = vcmp.lt.s32.totalorder %v569_v30, %v570_v31 }
 0x131   : > { %v572_v32 = vsel %vm571_vm4, %v569_v30, %v570_v31 }
 0x132   : > { %573 = vst [vmem:[%s297_s15] sm:$0x1] %v572_v32  ;;  %vm581_vm5 = vcmp.eq.s32.totalorder %v520_v9, %v572_v32  ;;  %vm580_vm6 = vcmp.eq.s32.totalorder %v519_v1, %v572_v32  ;;  %vm579_vm7 = vcmp.eq.s32.totalorder %v518_v6, %v572_v32  ;;  %vm578_vm8 = vcmp.eq.s32.totalorder %v517_v5, %v572_v32 }
 0x133   : > { %1063 = vmatprep.subr.msk.mxu1 %vm581_vm5, %v1258_v33  ;;  %vm577_vm9 = vcmp.eq.s32.totalorder %v516_v4, %v572_v32  ;;  %vm576_vm10 = vcmp.eq.s32.totalorder %v1457_v0, %v572_v32  ;;  %vm575_vm11 = vcmp.eq.s32.totalorder %v1461_v3, %v572_v32  ;;  %vm574_vm12 = vcmp.eq.s32.totalorder %v1454_v61, %v572_v32 }
 0x134   : > { %1064 = vmatpush3.msk.msra.mxu1 %vm581_vm5, %v1258_v33 }
 0x135   : > { %1065 = vmatprep.subr.msk.mxu1 %vm580_vm6, %v1258_v33 }
 0x136   : > { %1066 = vmatpush3.msk.msra.mxu1 %vm580_vm6, %v1258_v33 }
 0x137   : > { %1067 = vmatprep.subr.msk.mxu1 %vm579_vm7, %v1258_v33 }
 0x138   : > { %1068 = vmatpush3.msk.msra.mxu1 %vm579_vm7, %v1258_v33 }
 0x139   : > { %1069 = vmatprep.subr.msk.mxu1 %vm578_vm8, %v1258_v33 }
 0x13a   : > { %1070 = vmatpush3.msk.msra.mxu1 %vm578_vm8, %v1258_v33 }
 0x13b   : > { %1071 = vmatprep.subr.msk.mxu1 %vm577_vm9, %v1258_v33 }
 0x13c   : > { %1072 = vmatpush3.msk.msra.mxu1 %vm577_vm9, %v1258_v33 }
 0x13d   : > { %1073 = vmatprep.subr.msk.mxu1 %vm576_vm10, %v1258_v33 }
 0x13e   : > { %1074 = vmatpush3.msk.msra.mxu1 %vm576_vm10, %v1258_v33 }
 0x13f   : > { %1075 = vmatprep.subr.msk.mxu1 %vm575_vm11, %v1258_v33 }
 0x140   : > { %1076 = vmatpush3.msk.msra.mxu1 %vm575_vm11, %v1258_v33 }
 0x141   : > { %1077 = vmatprep.subr.msk.mxu1 %vm574_vm12, %v1258_v33 }
 0x142   : > { %1078 = vmatpush3.msk.msra.mxu1 %vm574_vm12, %v1258_v33 }
 0x143   : > { %1080 = vmatmul.mubr.msk.f32.vlgmr.msra.gmra.mxu1 %vm630_vm1, %v615_v34 }
 0x144   : > { %1082 = vmatprep.mubr.msk.f32.mxu1 %vm630_vm1, %v616_v35 }
 0x147   : > { %1083 = vmatmul.mubr.msk.f32.gmra.mxu1 %vm630_vm1, %v617_v36  ;;  %vm749_vm1 = vcmask 0  }
 0x203   : > { %v1081_v37 = vpop.f32.mrf.mxu1 }
 0x204   : > { %752 = vst [vmem:[%s1481_s17 + $0x8] sm:$0xff] %v1081_v37  ;;  %v729_v39 = vsub.f32 %v1081_v37, %v1400_v11 }
 0x205   : > { %v709_v38 = vpop.f32.mrf.mxu1 }
 0x206   : > { %v728_v40 = vsub.f32 %v709_v38, %v1407_v13  ;;  %751 = vst [vmem:[%s1481_s17] sm:$0xff] %v709_v38  ;;  %v733_v44 = vmul.f32 %v729_v39, %v729_v39 }
 0x207   : > { %v1084_v41 = vpop.f32.mrf.mxu1 }
 0x208   : > { %v732_v42 = vmul.f32 %v728_v40, %v728_v40  ;;  %754 = vst [vmem:[%s1481_s17 + $0x18] sm:$0xff] %v1084_v41  ;;  %v731_v45 = vsub.f32 %v1084_v41, %v1388_v7 }
 0x209   : > { %v719_v43 = vpop.f32.mrf.mxu1 }
 0x20a   : > { %v730_v46 = vsub.f32 %v719_v43, %v1390_v8  ;;  %753 = vst [vmem:[%s1481_s17 + $0x10] sm:$0xff] %v719_v43  ;;  %v736_v47 = vadd.f32 %v733_v44, %v732_v42  ;;  %v735_v11 = vmul.f32 %v731_v45, %v731_v45 }
 0x20b   : > { %v813_v57 = vld [vmem:[%s1481_s17 + $0x8] sm:$0xff] (%p1350_p8) }
 0x20c   : > { %v734_v48 = vmul.f32 %v730_v46, %v730_v46  ;;  %814 = vst [vmem:[%s776_s9 + $0x10] sm:$0xff] (%p1350_p8), %v813_v57 }
 0x20d   : > { %v811_v56 = vld [vmem:[%s1481_s17] sm:$0xff] (%p1350_p8) }
 0x20e   : > { %v737_v49 = vadd.f32 %v736_v47, %v734_v48  ;;  %812 = vst [vmem:[%s776_s9] sm:$0xff] (%p1350_p8), %v811_v56 }
 0x20f   : > { %v817_v59 = vld [vmem:[%s1481_s17 + $0x18] sm:$0xff] (%p1350_p8) }
 0x210   : > { %v738_v13 = vadd.f32 %v737_v49, %v735_v11  ;;  %818 = vst [vmem:[%s776_s9 + $0x30] sm:$0xff] (%p1350_p8), %v817_v59 }
 0x211   : > { %v815_v58 = vld [vmem:[%s1481_s17 + $0x10] sm:$0xff] (%p1350_p8) }
 0x212   : > { %739 = vadd.xlane.f32.xlu1 %v738_v13  ;;  %816 = vst [vmem:[%s776_s9 + $0x20] sm:$0xff] (%p1350_p8), %v815_v58 }
 0x29b   : > { %v740_v50 = vpop.xlane.xlu1 %739 }
 0x29c   : > { %v741_v51 = vrot.slane %v740_v50, 4 }
 0x29e   : > { %v742_v52 = vadd.f32 %v741_v51, %v740_v50 }
 0x2a0   : > { %v743_v53 = vrot.slane %v742_v52, 2 }
 0x2a2   : > { %v744_v54 = vadd.f32 %v743_v53, %v742_v52 }
 0x2a4   : > { %v745_v7 = vrot.slane %v744_v54, 1 }
 0x2a6   : > { %v746_v55 = vadd.f32 %v745_v7, %v744_v54 }
 0x2a8   : > { %1085 = vpush %v746_v55 }
 0x2d7   : > { %772 = sbr.rel (!%p1350_p8) target bundleno = 732 (0x2dc), region = 74 }
 0x2d9   : > { %s1086_s11 = spop %1085 }
 0x2da   : > { %v748_v8 = vstv %s1086_s11 }
 0x2db   : > { %750 = vst.msk [vmem:[%s313_s10] sm:$0x1] %vm749_vm1, %v748_v8 }
 0x2dc PF: > { %s1015_s10 = sshll.u32 %s1243_s22, 1  ;;  %s833_s11 = sshll.u32 %s297_s15, 4  ;;  %s834_s11 = int_to_ptr.vmem [resolvable:$true] %s833_s11 }
 0x2dd   : > { %s829_s13 = sadd.s32 %s1239_s21, %s1015_s10  ;;  %s1163_s27 = scalar_lea.vmem %s834_s11, 16 }
 0x2de   : > { %s1016_s17 = sshll.u32 %s829_s13, 4  ;;  %p1164_p3 = scmp.ne.s32.totalorder %s834_s11, %s1163_s27 }
 0x2df   : > { %s831_s16 = scalar_lea.hbm %s1563_s4, %s1016_s17  ;;  %s1259_s30 = smov [#allocation4]  }
 0x2e0   : > { %p1165_p4 = pnand %p1164_p3, %p1350_p8  ;;  %s1167_s9 = sshll.u32 %s1259_s30, 4  ;;  %s1168_s9 = int_to_ptr.vmem [resolvable:$false] %s1167_s9 }
 0x2e1   : > { %s1169_s0 = scalar_lea.vmem %s1168_s9, 32  ;;  %p1170_p6 = scmp.lt.s32.totalorder %s834_s11, %s1168_s9 }
 0x2e2   : > { %p1166_p5 = pneg %p1165_p4  ;;  %p1171_p7 = scmp.lt.s32.totalorder %s1169_s0, %s1163_s27 }
 0x2e4   : > { %p1172_p10 = por %p1171_p7, %p1170_p6 }
 0x2e6   : > { %p1173_p11 = pnand %p1172_p10, %p1166_p5 }
 0x2e8   : > { %1176 = shalt.err (!%p1173_p11)
}
 0x2e9   : > { %s1177_s21 = scalar_lea.hbm %s831_s16, 16  ;;  %s1181_s14 = scalar_lea.hbm %s1563_s4, 64 }
 0x2ea   : > { %p1178_p12 = scmp.ne.s32.totalorder %s831_s16, %s1177_s21  ;;  %p1182_p1 = scmp.lt.s32.totalorder %s831_s16, %s1563_s4 }
 0x2eb   : > { %p1183_p2 = scmp.lt.s32.totalorder %s1181_s14, %s1177_s21 }
 0x2ec   : > { %p1179_p13 = pnand %p1178_p12, %p1350_p8 }
 0x2ed   : > { %p1184_p3 = por %p1183_p2, %p1182_p1 }
 0x2ee   : > { %p1180_p0 = pneg %p1179_p13 }
 0x2f0   : > { %p1185_p4 = pnand %p1184_p3, %p1180_p0 }
 0x2f2   : > { %1188 = shalt.err (!%p1185_p4)
}
 0x2f3   : > { %s1570_s0 = scalar_lea.sflag [#allocation5], %s1376_s6 }
 0x2f4   : > { %1087 = dma.vmem_to_hbm [thread:$0]  (%p1350_p8), %s834_s11, 16, %s831_s16, %s1570_s0  }
 0x2f5 PF: > { %p1093_p5 = scmp.ge.s32.totalorder %s1255_s25, 2  ;;  %s855_s17 = sand.u32 1, %s1227_s18  }
 0x2f6   : > { %s856_s26 = scalar_lea.sflag [#allocation5], %s855_s17 }
 0x2f7   : > { %p1090_p6 = pnand %p1093_p5, %p1354_p9 }
 0x2f9   : > { %p1091_p7 = pneg %p1090_p6 }
 0x2fb   : > { %1222 = dma.done.wait (%p1091_p7), %s856_s26, 16  }
 0x2fc   : > { %1224 = vsyncadd (%p1091_p7), %s856_s26, 4294967280  ;;  %s19_s25 = sadd.s32 1, %s1255_s25   ;;  %s1571_s18 = smov %s1231_s19 }
 0x2fd   : > { %p16_p10 = scmp.ge.s32.totalorder %s19_s25, 6   ;;  %s1572_s19 = smov %s1235_s20 }
 0x2fe   : > { %s1573_s20 = smov %s1362_s12  ;;  %s1574_s21 = smov %s1247_s23 }
 0x2ff   : > { %s1575_s22 = smov %s1251_s24  ;;  %s1576_s23 = smov %s1579_s28 }
 0x300   : > { %s1577_s24 = smov %s1583_s29  ;;  %18 = sbr.rel (!%p16_p10) target bundleno = 7 (0x7), region = 172 }
 0x305   :  { %870 = vsyncpa [#allocation5], 1 }
 0x306   :  { %872 = vsyncpa [#allocation5 + $0x1], 1 }

</bundles_post_ra>
